<compile_context>
chip_gen: v5e
topology: v5e:2x2
jax: 0.10.0
libtpu: 0.0.40
codegen_flags: <defaults>
</compile_context>

<pallas_src>
import jax
import jax.numpy as jnp
from jax.experimental import pallas as pl
from jax.experimental.pallas import tpu as pltpu


# ----------------------------------------------------------------------------
# Packed parameter slab layout (f32, shape [50, 33]):
#   rows  0:16, cols 0:2   -> W1  (fc1.weight, [16, 2])
#   rows  0:16, col  32    -> b1  (fc1.bias,   [16])
#   rows 16:48, cols 0:16  -> W2  (fc2.weight, [32, 16])
#   rows 16:48, col  32    -> b2  (fc2.bias,   [32])
#   rows 48:50, cols 0:32  -> W3  (fc3.weight, [2, 32])
#   rows 48:50, col  32    -> b3  (fc3.bias,   [2])
# ----------------------------------------------------------------------------
_SLAB_SHAPE = (50, 33)


def _mlp_kernel(p_ref, x_ref, o_ref):
    # x tile: [2, TB]  (batch on the lane axis)
    x = x_ref[...]

    # Static views into the resident parameter slab (zero-cost .at-style slices).
    w1 = p_ref[0:16, 0:2]       # [16, 2]
    b1 = p_ref[0:16, 32:33]     # [16, 1]  -> broadcasts along lanes
    w2 = p_ref[16:48, 0:16]     # [32, 16]
    b2 = p_ref[16:48, 32:33]    # [32, 1]
    w3 = p_ref[48:50, 0:32]     # [2, 32]
    b3 = p_ref[48:50, 32:33]    # [2, 1]

    # fc1 (K=2): two lane-broadcast FMAs on the VPU instead of an MXU matmul.
    h1 = w1[:, 0:1] * x[0:1, :] + w1[:, 1:2] * x[1:2, :] + b1
    h1 = jnp.maximum(h1, 0.0)                                        # [16, TB]

    # fc2 + ReLU (MXU, N = batch tile -> lane-dense result).
    h2 = jnp.dot(w2, h1, preferred_element_type=jnp.float32) + b2
    h2 = jnp.maximum(h2, 0.0)                                        # [32, TB]

    # fc3 (no activation).
    out = jnp.dot(w3, h2, preferred_element_type=jnp.float32) + b3   # [2, TB]

    o_ref[...] = out.astype(o_ref.dtype)


def pack_params(params):
    """Pack torch-layout (out_features, in_features) weights + biases into one slab."""
    w1, b1, w2, b2, w3, b3 = params
    slab = jnp.zeros(_SLAB_SHAPE, jnp.float32)
    slab = slab.at[0:16, 0:2].set(w1.astype(jnp.float32))
    slab = slab.at[0:16, 32].set(b1.astype(jnp.float32))
    slab = slab.at[16:48, 0:16].set(w2.astype(jnp.float32))
    slab = slab.at[16:48, 32].set(b2.astype(jnp.float32))
    slab = slab.at[48:50, 0:32].set(w3.astype(jnp.float32))
    slab = slab.at[48:50, 32].set(b3.astype(jnp.float32))
    return slab


def _pick_tile(b, max_tile=512):
    """Smallest multiple of 128 covering B, capped at max_tile (lane-dense)."""
    b128 = ((b + 127) // 128) * 128
    return min(max_tile, b128)


def simple_generator_forward(x, params, *, tile_b=None):
    """Forward pass of the MLP.  x: [B, 2] float32 -> [B, 2] float32."""
    slab = pack_params(params)

    B = x.shape[0]
    if tile_b is None:
        tile_b = _pick_tile(B)
    n_tiles = pl.cdiv(B, tile_b)
    b_pad = n_tiles * tile_b

    # Batch-on-lanes layout, zero-padded to a multiple of the lane tile.
    x_t = jnp.zeros((2, b_pad), jnp.float32).at[:, :B].set(x.T.astype(jnp.float32))

    grid_spec = pltpu.PrefetchScalarGridSpec(
        num_scalar_prefetch=0,
        grid=(n_tiles,),
        in_specs=[
            # Parameter slab: constant block index -> DMA'd once, stays resident.
            pl.BlockSpec(_SLAB_SHAPE, lambda i: (0, 0)),
            # Activations: lane-dense [2, TB] tiles marching along the batch.
            pl.BlockSpec((2, tile_b), lambda i: (0, i)),
        ],
        out_specs=pl.BlockSpec((2, tile_b), lambda i: (0, i)),
    )

    out_t = pl.pallas_call(
        _mlp_kernel,
        out_shape=jax.ShapeDtypeStruct((2, b_pad), jnp.float32),
        grid_spec=grid_spec,
        compiler_params=pltpu.CompilerParams(
            dimension_semantics=("parallel",),
        ),
    )(slab, x_t)

    # Back to the module's [B, 2] layout, dropping batch padding.
    return out_t[:, :B].T


# ----------------------------------------------------------------------------
# Deterministic init mirroring nn.Linear (weights stored as [out, in], torch-style)
# ----------------------------------------------------------------------------
def init_params(key):
    def linear(k, fan_in, fan_out):
        kw, kb = jax.random.split(k)
        bound = 1.0 / jnp.sqrt(jnp.float32(fan_in))
        w = jax.random.uniform(kw, (fan_out, fan_in), jnp.float32, -bound, bound)
        b = jax.random.uniform(kb, (fan_out,), jnp.float32, -bound, bound)
        return w, b

    k1, k2, k3 = jax.random.split(key, 3)
    w1, b1 = linear(k1, 2, 16)
    w2, b2 = linear(k2, 16, 32)
    w3, b3 = linear(k3, 32, 2)
    return (w1, b1, w2, b2, w3, b3)


def reference_forward(x, params):
    w1, b1, w2, b2, w3, b3 = params
    h = jnp.maximum(x @ w1.T + b1, 0.0)
    h = jnp.maximum(h @ w2.T + b2, 0.0)
    return h @ w3.T + b3


if __name__ == "__main__":
    key = jax.random.PRNGKey(0)
    k_params, k_x1, k_x2 = jax.random.split(key, 3)
    params = init_params(k_params)

    # Small batch of 2-D points, consistent with fc1 = nn.Linear(2, 16).
    x_small = jax.random.normal(k_x1, (8, 2), dtype=jnp.float32)
    out_small = jax.block_until_ready(simple_generator_forward(x_small, params))
    ref_small = reference_forward(x_small, params)
    assert out_small.shape == (8, 2)
    assert jnp.allclose(out_small, ref_small, atol=1e-5, rtol=1e-5), "mismatch (B=8)"

    # Exercise the multi-tile grid + batch padding path (tile_b=512, 2 steps).
    x_big = jax.random.normal(k_x2, (700, 2), dtype=jnp.float32)
    out_big = jax.block_until_ready(simple_generator_forward(x_big, params))
    ref_big = reference_forward(x_big, params)
    assert out_big.shape == (700, 2)
    assert jnp.allclose(out_big, ref_big, atol=1e-5, rtol=1e-5), "mismatch (B=700)"

    print("KERNEL_OK")
</pallas_src>

<mosaic_0001>
module attributes {stable_mosaic.version = 11 : i64} {
  func.func @_mlp_kernel(%arg0: i32, %arg1: memref<50x33xf32, #tpu.memory_space<vmem>>, %arg2: memref<2x128xf32, #tpu.memory_space<vmem>>, %arg3: memref<2x128xf32, #tpu.memory_space<vmem>>) attributes {dimension_semantics = [#tpu.dimension_semantics<parallel>], iteration_bounds = array<i64: 1>, scalar_prefetch = 0 : i64, scratch_operands = 0 : i64, tpu.core_type = #tpu.core_type<tc>, window_params = [{pipeline_mode = #tpu.pipeline_mode<synchronous>, transform_indices = @transform_0, window_bounds = array<i64: 50, 33>}, {transform_indices = @transform_1, window_bounds = array<i64: 2, 128>}, {transform_indices = @transform_2, window_bounds = array<i64: 2, 128>}]} {
    %c0 = arith.constant 0 : index
    %c0_0 = arith.constant 0 : index
    %0 = vector.load %arg2[%c0, %c0_0] : memref<2x128xf32, #tpu.memory_space<vmem>>, vector<2x128xf32>
    %c0_1 = arith.constant 0 : index
    %c0_2 = arith.constant 0 : index
    %1 = vector.load %arg1[%c0_1, %c0_2] : memref<50x33xf32, #tpu.memory_space<vmem>>, vector<16x2xf32>
    %c0_3 = arith.constant 0 : index
    %c32 = arith.constant 32 : index
    %2 = vector.load %arg1[%c0_3, %c32] : memref<50x33xf32, #tpu.memory_space<vmem>>, vector<16x1xf32>
    %c16 = arith.constant 16 : index
    %c0_4 = arith.constant 0 : index
    %3 = vector.load %arg1[%c16, %c0_4] : memref<50x33xf32, #tpu.memory_space<vmem>>, vector<32x16xf32>
    %c16_5 = arith.constant 16 : index
    %c32_6 = arith.constant 32 : index
    %4 = vector.load %arg1[%c16_5, %c32_6] : memref<50x33xf32, #tpu.memory_space<vmem>>, vector<32x1xf32>
    %c48 = arith.constant 48 : index
    %c0_7 = arith.constant 0 : index
    %5 = vector.load %arg1[%c48, %c0_7] : memref<50x33xf32, #tpu.memory_space<vmem>>, vector<2x32xf32>
    %c48_8 = arith.constant 48 : index
    %c32_9 = arith.constant 32 : index
    %6 = vector.load %arg1[%c48_8, %c32_9] : memref<50x33xf32, #tpu.memory_space<vmem>>, vector<2x1xf32>
    %7 = vector.extract_strided_slice %1 {offsets = [0, 0], sizes = [16, 1], strides = [1, 1]} : vector<16x2xf32> to vector<16x1xf32>
    %8 = vector.extract_strided_slice %0 {offsets = [0, 0], sizes = [1, 128], strides = [1, 1]} : vector<2x128xf32> to vector<1x128xf32>
    %9 = vector.broadcast %7 : vector<16x1xf32> to vector<16x128xf32>
    %10 = vector.broadcast %8 : vector<1x128xf32> to vector<16x128xf32>
    %11 = arith.mulf %9, %10 : vector<16x128xf32>
    %12 = vector.extract_strided_slice %1 {offsets = [0, 1], sizes = [16, 1], strides = [1, 1]} : vector<16x2xf32> to vector<16x1xf32>
    %13 = vector.extract_strided_slice %0 {offsets = [1, 0], sizes = [1, 128], strides = [1, 1]} : vector<2x128xf32> to vector<1x128xf32>
    %14 = vector.broadcast %12 : vector<16x1xf32> to vector<16x128xf32>
    %15 = vector.broadcast %13 : vector<1x128xf32> to vector<16x128xf32>
    %16 = arith.mulf %14, %15 : vector<16x128xf32>
    %17 = arith.addf %11, %16 : vector<16x128xf32>
    %18 = vector.broadcast %2 : vector<16x1xf32> to vector<16x128xf32>
    %19 = arith.addf %17, %18 : vector<16x128xf32>
    %cst = arith.constant 0.000000e+00 : f32
    %20 = vector.broadcast %cst : f32 to vector<16x128xf32>
    %21 = arith.maximumf %19, %20 : vector<16x128xf32>
    %cst_10 = arith.constant dense<0.000000e+00> : vector<32x128xf32>
    %22 = tpu.matmul %3, %21, %cst_10 {dimension_numbers = #tpu.dot_dimension_numbers<[1], [0], [0], [1], [0, 0, 1, 1], [], []>} : vector<32x16xf32>, vector<16x128xf32>, vector<32x128xf32> -> vector<32x128xf32>
    %23 = vector.broadcast %4 : vector<32x1xf32> to vector<32x128xf32>
    %24 = arith.addf %22, %23 : vector<32x128xf32>
    %cst_11 = arith.constant 0.000000e+00 : f32
    %25 = vector.broadcast %cst_11 : f32 to vector<32x128xf32>
    %26 = arith.maximumf %24, %25 : vector<32x128xf32>
    %cst_12 = arith.constant dense<0.000000e+00> : vector<2x128xf32>
    %27 = tpu.matmul %5, %26, %cst_12 {dimension_numbers = #tpu.dot_dimension_numbers<[1], [0], [0], [1], [0, 0, 1, 1], [], []>} : vector<2x32xf32>, vector<32x128xf32>, vector<2x128xf32> -> vector<2x128xf32>
    %28 = vector.broadcast %6 : vector<2x1xf32> to vector<2x128xf32>
    %29 = arith.addf %27, %28 : vector<2x128xf32>
    %c0_13 = arith.constant 0 : index
    %c0_14 = arith.constant 0 : index
    %30 = vector.load %arg3[%c0_13, %c0_14] : memref<2x128xf32, #tpu.memory_space<vmem>>, vector<2x128xf32>
    tpu.vector_store %arg3[%c0_13, %c0_14], %29 {strides = array<i32>} : memref<2x128xf32, #tpu.memory_space<vmem>>, vector<2x128xf32>,
    return
  }
  func.func @transform_0(%arg0: i32) -> (i32, i32) {
    %c0_i32 = arith.constant 0 : i32
    %c0_i32_0 = arith.constant 0 : i32
    %c0_i32_1 = arith.constant 0 : i32
    return %c0_i32, %c0_i32_0 : i32, i32
  }
  func.func @transform_1(%arg0: i32) -> (i32, i32) {
    %c0_i32 = arith.constant 0 : i32
    %c0_i32_0 = arith.constant 0 : i32
    return %c0_i32, %arg0 : i32, i32
  }
  func.func @transform_2(%arg0: i32) -> (i32, i32) {
    %c0_i32 = arith.constant 0 : i32
    %c0_i32_0 = arith.constant 0 : i32
    return %c0_i32, %arg0 : i32, i32
  }
}

</mosaic_0001>

<bundles_post_ra>
// kernel: tpu_custom_call.1
= control target key start
LH: loop header
LB: loop body
LE: loop exit
PB: predicated region body
PF: predicated region fallthrough
CT: control target
= control target key end

     0   :  { %v211_v2 = vmov 0   ;;  %s257_s0 = inlined_call_operand.vmem [shape: f32[50,33], index: 0, kind: input, shape index: {}]   ;;  %s258_s1 = inlined_call_operand.vmem [shape: f32[2,128], index: 1, kind: input, shape index: {}]   ;;  %s259_s2 = inlined_call_operand.hbm [shape: f32[2,128], index: 2, kind: output, shape index: {}]  }
   0x1   :  { %v14_v0 = vld [vmem:[%s257_s0 + $0x8] sm:$0xff]  ;;  %v13_v1 = vld [vmem:[%s257_s0] sm:$0xff]  ;;  %180 = vset.pattern.permute.xlu1 %v211_v2  ;;  %178 = vset.pattern.permute.xlu0 %v211_v2 }
   0x2   :  { %7 = vsyncpa [#allocation3], 0  ;;  %27 = vperm.xlu0 %178, %v14_v0   ;;  %22 = vperm.xlu1 %180, %v13_v1   ;;  %v212_v3 = vmov 32   ;;  %v213_v4 = vmov 1   ;;  %v17_v5 = vld [vmem:[%s257_s0 + $0x20] sm:$0xff]  ;;  %v16_v7 = vld [vmem:[%s257_s0 + $0x18] sm:$0xff] }
   0x3   :  { %182 = vset.pattern.permute.xlu2 %v212_v3  ;;  %v19_v6 = vld [vmem:[%s257_s0 + $0x30] sm:$0x3]  ;;  %v18_v8 = vld [vmem:[%s257_s0 + $0x28] sm:$0xff]  ;;  %v12_v13 = vld [vmem:[%s258_s1] sm:$0x3]  ;;  %vm78_vm0 = vcmask 130048  }
   0x4   :  { %51 = vperm.xlu2 %182, %v14_v0   ;;  %v15_v9 = vld [vmem:[%s257_s0 + $0x10] sm:$0xff]  ;;  %v30_v14 = vperm.slane %v12_v13, 0  ;;  %v41_v15 = vperm.slane %v12_v13, 1  ;;  %vm125_vm1 = vcmask 261120   ;;  %s214_s0 = smov [#allocation2]   ;;  %s156_s27 = sshll.u32 %s259_s2, 4  ;;  %s157_s27 = int_to_ptr.hbm [resolvable:$true] %s156_s27 }
   0x5   :  { %s154_s1 = sshll.u32 %s214_s0, 4  ;;  %s155_s1 = int_to_ptr.vmem [resolvable:$true] %s154_s1 }
   0xa   :  { %179 = vset.pattern.permute.xlu0 %v213_v4  ;;  %181 = vset.pattern.permute.xlu1 %v213_v4 }
   0xb   :  { %38 = vperm.xlu0 %179, %v14_v0   ;;  %34 = vperm.xlu1 %181, %v13_v1  }
   0xc   :  { %47 = vperm.xlu2 %182, %v13_v1  }
  0x13   :  { %183 = vset.pattern.permute.xlu1 %v212_v3  ;;  %184 = vset.pattern.permute.xlu0 %v212_v3 }
  0x14   :  { %70 = vperm.xlu2 %182, %v17_v5   ;;  %75 = vperm.xlu1 %183, %v18_v8  }
  0x15   :  { %65 = vperm.xlu0 %184, %v16_v7  }
  0x1c   :  { %122 = vperm.xlu2 %182, %v19_v6   ;;  %60 = vperm.xlu1 %183, %v15_v9  }
  0x5e   :  { %v52_v12 = vpop.permute.xlu2 %51 }
  0x66   :  { %v48_v24 = vpop.permute.xlu2 %47 }
  0x6e   :  { %v71_v35 = vpop.permute.xlu2 %70 }
  0x74   :  { %v28_v10 = vpop.permute.xlu0 %27  ;;  %v23_v11 = vpop.permute.xlu1 %22 }
  0x75   :  { %v32_v18 = vmul.f32 %v30_v14, %v28_v10  ;;  %v31_v19 = vmul.f32 %v30_v14, %v23_v11 }
  0x76   :  { %v123_v45 = vpop.permute.xlu2 %122 }
  0x7d   :  { %v39_v16 = vpop.permute.xlu0 %38  ;;  %v35_v17 = vpop.permute.xlu1 %34 }
  0x7e   :  { %v43_v20 = vmul.f32 %v41_v15, %v39_v16  ;;  %v42_v21 = vmul.f32 %v41_v15, %v35_v17 }
  0x80   :  { %v45_v22 = vadd.f32 %v43_v20, %v32_v18  ;;  %v44_v23 = vadd.f32 %v42_v21, %v31_v19 }
  0x82   :  { %v55_v25 = vadd.f32 %v52_v12, %v45_v22  ;;  %v54_v26 = vadd.f32 %v48_v24, %v44_v23 }
  0x84   :  { %v57_v27 = vmax.f32 %v55_v25, 0.0  ;;  %v56_v28 = vmax.f32 %v54_v26, 0.0 }
  0x86   :  { %101 = vmatpush.msra.mxu0 %v57_v27  ;;  %170 = vmatpush.msra.mxu2 %v57_v27  ;;  %v76_v29 = vpop.permute.xlu1 %75 }
  0x87   :  { %171 = vmatpush.msra.mxu3 %v57_v27  ;;  %v66_v34 = vpop.permute.xlu0 %65 }
  0x88   :  { %102 = vmatpush.msra.mxu0 %v56_v28  ;;  %172 = vmatpush.msra.mxu2 %v56_v28 }
  0x89   :  { %173 = vmatpush.msra.mxu3 %v56_v28  ;;  %166 = vmatmul.msk.f32.vlgmr.msra.gmra.mxu2 %vm78_vm0, %v16_v7 }
  0x8a   :  { %168 = vmatmul.msk.f32.vlgmr.msra.gmra.mxu3 %vm78_vm0, %v18_v8  ;;  %165 = vmatmul.msk.f32.vlgmr.msra.gmra.mxu0 %vm78_vm0, %v15_v9 }
  0x8e   :  { %v61_v36 = vpop.permute.xlu1 %60 }
  0x91   :  { %167 = vmatmul.msk.f32.gmra.mxu2 %vm78_vm0, %v17_v5 }
 0x107   :  { %v104_v37 = vpop.f32.mrf.mxu0 }
 0x108   :  { %v105_v41 = vadd.f32 %v104_v37, %v61_v36 }
 0x10a   :  { %v116_v44 = vmax.f32 %v105_v41, 0.0 }
 0x10c   :  { %v107_v30 = vpop.f32.mrf.mxu2 }
 0x10d   :  { %v113_v31 = vpop.f32.mrf.mxu3  ;;  %v108_v39 = vadd.f32 %v107_v30, %v66_v34 }
 0x10e   :  { %v114_v32 = vadd.f32 %v113_v31, %v76_v29 }
 0x10f   :  { %v117_v43 = vmax.f32 %v108_v39, 0.0 }
 0x110   :  { %v119_v33 = vmax.f32 %v114_v32, 0.0 }
 0x112   :  { %140 = vmatpush.msra.mxu1 %v119_v33 }
 0x114   :  { %v110_v38 = vpop.f32.mrf.mxu2 }
 0x115   :  { %v111_v40 = vadd.f32 %v110_v38, %v71_v35 }
 0x117   :  { %v118_v42 = vmax.f32 %v111_v40, 0.0 }
 0x119   :  { %141 = vmatpush.msra.mxu1 %v118_v42 }
 0x11b   :  { %142 = vmatpush.msra.mxu1 %v117_v43 }
 0x11d   :  { %143 = vmatpush.msra.mxu1 %v116_v44 }
 0x11e   :  { %169 = vmatmul.msk.f32.vlgmr.msra.gmra.mxu1 %vm125_vm1, %v19_v6 }
 0x19b   :  { %v145_v46 = vpop.f32.mrf.mxu1 }
 0x19c   :  { %v146_v47 = vadd.f32 %v145_v46, %v123_v45 }
 0x19e   :  { %148 = vst [vmem:[#allocation2] sm:$0x3] %v146_v47 }
 0x19f   :  { %159 = dma.vmem_to_hbm [thread:$0]  %s155_s1, 32, %s157_s27, [#allocation3]  }
 0x1a0   :  { %209 = dma.done.wait [#allocation3], 32  }
 0x1a1   :  { %210 = vsyncadd [#allocation3], 4294967264 }
 0x1a2   :  { %164 = vsyncpa [#allocation3], 1 }

</bundles_post_ra>
